<compile_context>
chip_gen: v5e
topology: v5e:2x2
jax: 0.10.0
libtpu: 0.0.40
codegen_flags: <defaults>
</compile_context>

<pallas_src>
import functools

import jax
import jax.numpy as jnp
from jax.experimental import pallas as pl
from jax.experimental.pallas import tpu as pltpu

# Problem sizes (small, consistent with the module).
B, C, H, W = 2, 4, 16, 16
KSIZE = 3


def _spatial_attn_kernel(w_ref, x_ref, o_ref, *, C, H, W, K):
    """Whole batch in one step.

    w_ref : SMEM (2*K*K,)   conv weights, flattened [cin, kh, kw] (cin0=avg, cin1=max)
    x_ref : VMEM (B, C, H*W) input, spatial dims flattened (lane-dense)
    o_ref : VMEM (B, H*W)    sigmoid(conv) output, spatial dims flattened
    """
    PAD = K // 2
    HW = H * W
    Bs = o_ref.shape[0]

    x = x_ref[...].astype(jnp.float32)            # (B, C, HW)

    # Channel-wise reductions (dim=1 in NCHW), unrolled over the tiny C.
    avg = x[:, 0, :]
    mx = x[:, 0, :]
    for c in range(1, C):
        xc = x[:, c, :]
        avg = avg + xc
        mx = jnp.maximum(mx, xc)
    avg = avg * jnp.float32(1.0 / C)              # mean = sum * (1/C)  (VPU mul)

    # Hoist all scalar weight loads (SMEM) ahead of the vector FMA chain.
    w_avg = [w_ref[t] for t in range(K * K)]
    w_max = [w_ref[K * K + t] for t in range(K * K)]

    # Flat index -> (h, w) coordinates for the zero-padding boundary masks.
    flat = jax.lax.broadcasted_iota(jnp.int32, (Bs, HW), 1)
    h_idx = jax.lax.div(flat, jnp.int32(W))
    w_idx = jax.lax.rem(flat, jnp.int32(W))

    acc = jnp.zeros((Bs, HW), jnp.float32)
    for kh in range(K):                           # tap row    -> dh = kh - PAD
        dh = kh - PAD
        for kw in range(K):                       # tap column -> dw = kw - PAD
            dw = kw - PAD
            t = kh * K + kw

            # Scalar tap weights commute with the spatial shift, so combine the
            # two channels first (VPU FMAs), then do ONE lane roll per tap (XLU).
            pre = w_avg[t] * avg + w_max[t] * mx  # (B, HW)

            d = dh * W + dw                       # flat offset of this tap
            if d != 0:
                # rolled[p] = pre[(p + d) mod HW]  (jnp.roll convention: shift = -d);
                # wrapped positions are killed by the boundary mask below.
                pre = pltpu.roll(pre, shift=(-d) % HW, axis=1)

            # Zero-padding mask: only the conditions that can actually fail.
            mask = None
            if dh > 0:
                mask = h_idx < (H - dh)
            elif dh < 0:
                mask = h_idx >= (-dh)
            if dw > 0:
                mw = w_idx < (W - dw)
                mask = mw if mask is None else (mask & mw)
            elif dw < 0:
                mw = w_idx >= (-dw)
                mask = mw if mask is None else (mask & mw)

            acc = acc + (pre if mask is None else jnp.where(mask, pre, 0.0))

    o_ref[...] = jax.nn.sigmoid(acc).astype(o_ref.dtype)


def real_spatial_attention(x, weight):
    """x: (B, C, H, W), weight: (1, 2, K, K) -> (B, 1, H, W)."""
    b, c, h, w = x.shape
    o, i, kh, kw = weight.shape
    assert o == 1 and i == 2 and kh == kw
    k = kh
    hw = h * w

    x_flat = x.reshape(b, c, hw)                      # lane-dense last dim (h*w)
    w_flat = weight.reshape(-1).astype(jnp.float32)   # (2*K*K,), [cin, kh, kw]

    kernel = functools.partial(_spatial_attn_kernel, C=c, H=h, W=w, K=k)

    out_flat = pl.pallas_call(
        kernel,
        out_shape=jax.ShapeDtypeStruct((b, hw), x.dtype),
        in_specs=[
            pl.BlockSpec(memory_space=pltpu.MemorySpace.SMEM),   # weights (scalars)
            pl.BlockSpec(memory_space=pltpu.MemorySpace.VMEM),   # x, whole batch
        ],
        out_specs=pl.BlockSpec(memory_space=pltpu.MemorySpace.VMEM),
    )(w_flat, x_flat)

    return out_flat.reshape(b, 1, h, w)


def _reference(x, weight):
    """Pure-JAX reference matching the PyTorch forward."""
    pad = weight.shape[-1] // 2
    avg = jnp.mean(x, axis=1, keepdims=True)
    mx = jnp.max(x, axis=1, keepdims=True)
    cat = jnp.concatenate([avg, mx], axis=1)                 # (B, 2, H, W)
    y = jax.lax.conv_general_dilated(
        cat, weight, window_strides=(1, 1),
        padding=[(pad, pad), (pad, pad)],
        dimension_numbers=("NCHW", "OIHW", "NCHW"))
    return jax.nn.sigmoid(y)


if __name__ == "__main__":
    key = jax.random.PRNGKey(0)
    kx, kw = jax.random.split(key)

    x = jax.random.normal(kx, (B, C, H, W), dtype=jnp.float32)
    # Conv2d(2, 1, K, bias=False) weight, kaiming-uniform-like bound as in PyTorch.
    fan_in = 2 * KSIZE * KSIZE
    bound = (1.0 / fan_in) ** 0.5
    weight = jax.random.uniform(kw, (1, 2, KSIZE, KSIZE),
                                minval=-bound, maxval=bound, dtype=jnp.float32)

    out = real_spatial_attention(x, weight)
    out = jax.block_until_ready(out)

    ref = jax.block_until_ready(_reference(x, weight))
    assert out.shape == (B, 1, H, W)
    assert jnp.allclose(out, ref, atol=1e-5, rtol=1e-5), "mismatch vs reference"

    print("KERNEL_OK")
</pallas_src>

<mosaic_0001>
module attributes {stable_mosaic.version = 11 : i64} {
  func.func @_spatial_attn_kernel(%arg0: memref<18xf32, #tpu.memory_space<smem>>, %arg1: memref<2x4x256xf32, #tpu.memory_space<vmem>>, %arg2: memref<2x256xf32, #tpu.memory_space<vmem>>) attributes {dimension_semantics = [], scalar_prefetch = 0 : i64, scratch_operands = 0 : i64, tpu.core_type = #tpu.core_type<tc>} {
    %c0 = arith.constant 0 : index
    %c0_0 = arith.constant 0 : index
    %c0_1 = arith.constant 0 : index
    %0 = vector.load %arg1[%c0, %c0_0, %c0_1] : memref<2x4x256xf32, #tpu.memory_space<vmem>>, vector<2x4x256xf32>
    %1 = vector.extract_strided_slice %0 {offsets = [0, 0, 0], sizes = [2, 1, 256], strides = [1, 1, 1]} : vector<2x4x256xf32> to vector<2x1x256xf32>
    %2 = vector.shape_cast %1 : vector<2x1x256xf32> to vector<2x256xf32>
    %3 = vector.extract_strided_slice %0 {offsets = [0, 0, 0], sizes = [2, 1, 256], strides = [1, 1, 1]} : vector<2x4x256xf32> to vector<2x1x256xf32>
    %4 = vector.shape_cast %3 : vector<2x1x256xf32> to vector<2x256xf32>
    %5 = vector.extract_strided_slice %0 {offsets = [0, 1, 0], sizes = [2, 1, 256], strides = [1, 1, 1]} : vector<2x4x256xf32> to vector<2x1x256xf32>
    %6 = vector.shape_cast %5 : vector<2x1x256xf32> to vector<2x256xf32>
    %7 = arith.addf %2, %6 : vector<2x256xf32>
    %8 = arith.maximumf %4, %6 : vector<2x256xf32>
    %9 = vector.extract_strided_slice %0 {offsets = [0, 2, 0], sizes = [2, 1, 256], strides = [1, 1, 1]} : vector<2x4x256xf32> to vector<2x1x256xf32>
    %10 = vector.shape_cast %9 : vector<2x1x256xf32> to vector<2x256xf32>
    %11 = arith.addf %7, %10 : vector<2x256xf32>
    %12 = arith.maximumf %8, %10 : vector<2x256xf32>
    %13 = vector.extract_strided_slice %0 {offsets = [0, 3, 0], sizes = [2, 1, 256], strides = [1, 1, 1]} : vector<2x4x256xf32> to vector<2x1x256xf32>
    %14 = vector.shape_cast %13 : vector<2x1x256xf32> to vector<2x256xf32>
    %15 = arith.addf %11, %14 : vector<2x256xf32>
    %16 = arith.maximumf %12, %14 : vector<2x256xf32>
    %cst = arith.constant 2.500000e-01 : f32
    %17 = vector.broadcast %cst : f32 to vector<2x256xf32>
    %18 = arith.mulf %15, %17 : vector<2x256xf32>
    %c0_2 = arith.constant 0 : index
    %19 = memref.load %arg0[%c0_2] : memref<18xf32, #tpu.memory_space<smem>>
    %c1 = arith.constant 1 : index
    %20 = memref.load %arg0[%c1] : memref<18xf32, #tpu.memory_space<smem>>
    %c2 = arith.constant 2 : index
    %21 = memref.load %arg0[%c2] : memref<18xf32, #tpu.memory_space<smem>>
    %c3 = arith.constant 3 : index
    %22 = memref.load %arg0[%c3] : memref<18xf32, #tpu.memory_space<smem>>
    %c4 = arith.constant 4 : index
    %23 = memref.load %arg0[%c4] : memref<18xf32, #tpu.memory_space<smem>>
    %c5 = arith.constant 5 : index
    %24 = memref.load %arg0[%c5] : memref<18xf32, #tpu.memory_space<smem>>
    %c6 = arith.constant 6 : index
    %25 = memref.load %arg0[%c6] : memref<18xf32, #tpu.memory_space<smem>>
    %c7 = arith.constant 7 : index
    %26 = memref.load %arg0[%c7] : memref<18xf32, #tpu.memory_space<smem>>
    %c8 = arith.constant 8 : index
    %27 = memref.load %arg0[%c8] : memref<18xf32, #tpu.memory_space<smem>>
    %c9 = arith.constant 9 : index
    %28 = memref.load %arg0[%c9] : memref<18xf32, #tpu.memory_space<smem>>
    %c10 = arith.constant 10 : index
    %29 = memref.load %arg0[%c10] : memref<18xf32, #tpu.memory_space<smem>>
    %c11 = arith.constant 11 : index
    %30 = memref.load %arg0[%c11] : memref<18xf32, #tpu.memory_space<smem>>
    %c12 = arith.constant 12 : index
    %31 = memref.load %arg0[%c12] : memref<18xf32, #tpu.memory_space<smem>>
    %c13 = arith.constant 13 : index
    %32 = memref.load %arg0[%c13] : memref<18xf32, #tpu.memory_space<smem>>
    %c14 = arith.constant 14 : index
    %33 = memref.load %arg0[%c14] : memref<18xf32, #tpu.memory_space<smem>>
    %c15 = arith.constant 15 : index
    %34 = memref.load %arg0[%c15] : memref<18xf32, #tpu.memory_space<smem>>
    %c16 = arith.constant 16 : index
    %35 = memref.load %arg0[%c16] : memref<18xf32, #tpu.memory_space<smem>>
    %c17 = arith.constant 17 : index
    %36 = memref.load %arg0[%c17] : memref<18xf32, #tpu.memory_space<smem>>
    %37 = tpu.iota {dimensions = array<i32: 1>} : vector<2x256xi32>
    %c16_i32 = arith.constant 16 : i32
    %38 = vector.broadcast %c16_i32 : i32 to vector<2x256xi32>
    %39 = arith.divsi %37, %38 : vector<2x256xi32>
    %c16_i32_3 = arith.constant 16 : i32
    %40 = vector.broadcast %c16_i32_3 : i32 to vector<2x256xi32>
    %41 = arith.remsi %37, %40 : vector<2x256xi32>
    %cst_4 = arith.constant 0.000000e+00 : f32
    %42 = vector.broadcast %cst_4 : f32 to vector<2x256xf32>
    %43 = vector.broadcast %19 : f32 to vector<2x256xf32>
    %44 = arith.mulf %43, %18 : vector<2x256xf32>
    %45 = vector.broadcast %28 : f32 to vector<2x256xf32>
    %46 = arith.mulf %45, %16 : vector<2x256xf32>
    %47 = arith.addf %44, %46 : vector<2x256xf32>
    %c17_i32 = arith.constant 17 : i32
    %48 = tpu.dynamic_rotate %47 by %c17_i32 dim 1 : vector<2x256xf32>, i32 -> vector<2x256xf32>
    %c1_i32 = arith.constant 1 : i32
    %49 = vector.broadcast %c1_i32 : i32 to vector<2x256xi32>
    %50 = arith.cmpi sge, %39, %49 : vector<2x256xi32>
    %c1_i32_5 = arith.constant 1 : i32
    %51 = vector.broadcast %c1_i32_5 : i32 to vector<2x256xi32>
    %52 = arith.cmpi sge, %41, %51 : vector<2x256xi32>
    %53 = arith.andi %50, %52 : vector<2x256xi1>
    %cst_6 = arith.constant 0.000000e+00 : f32
    %54 = vector.broadcast %cst_6 : f32 to vector<2x256xf32>
    %55 = arith.select %53, %48, %54 : vector<2x256xi1>, vector<2x256xf32>
    %56 = arith.addf %42, %55 : vector<2x256xf32>
    %57 = vector.broadcast %20 : f32 to vector<2x256xf32>
    %58 = arith.mulf %57, %18 : vector<2x256xf32>
    %59 = vector.broadcast %29 : f32 to vector<2x256xf32>
    %60 = arith.mulf %59, %16 : vector<2x256xf32>
    %61 = arith.addf %58, %60 : vector<2x256xf32>
    %c16_i32_7 = arith.constant 16 : i32
    %62 = tpu.dynamic_rotate %61 by %c16_i32_7 dim 1 : vector<2x256xf32>, i32 -> vector<2x256xf32>
    %c1_i32_8 = arith.constant 1 : i32
    %63 = vector.broadcast %c1_i32_8 : i32 to vector<2x256xi32>
    %64 = arith.cmpi sge, %39, %63 : vector<2x256xi32>
    %cst_9 = arith.constant 0.000000e+00 : f32
    %65 = vector.broadcast %cst_9 : f32 to vector<2x256xf32>
    %66 = arith.select %64, %62, %65 : vector<2x256xi1>, vector<2x256xf32>
    %67 = arith.addf %56, %66 : vector<2x256xf32>
    %68 = vector.broadcast %21 : f32 to vector<2x256xf32>
    %69 = arith.mulf %68, %18 : vector<2x256xf32>
    %70 = vector.broadcast %30 : f32 to vector<2x256xf32>
    %71 = arith.mulf %70, %16 : vector<2x256xf32>
    %72 = arith.addf %69, %71 : vector<2x256xf32>
    %c15_i32 = arith.constant 15 : i32
    %73 = tpu.dynamic_rotate %72 by %c15_i32 dim 1 : vector<2x256xf32>, i32 -> vector<2x256xf32>
    %c1_i32_10 = arith.constant 1 : i32
    %74 = vector.broadcast %c1_i32_10 : i32 to vector<2x256xi32>
    %75 = arith.cmpi sge, %39, %74 : vector<2x256xi32>
    %c15_i32_11 = arith.constant 15 : i32
    %76 = vector.broadcast %c15_i32_11 : i32 to vector<2x256xi32>
    %77 = arith.cmpi slt, %41, %76 : vector<2x256xi32>
    %78 = arith.andi %75, %77 : vector<2x256xi1>
    %cst_12 = arith.constant 0.000000e+00 : f32
    %79 = vector.broadcast %cst_12 : f32 to vector<2x256xf32>
    %80 = arith.select %78, %73, %79 : vector<2x256xi1>, vector<2x256xf32>
    %81 = arith.addf %67, %80 : vector<2x256xf32>
    %82 = vector.broadcast %22 : f32 to vector<2x256xf32>
    %83 = arith.mulf %82, %18 : vector<2x256xf32>
    %84 = vector.broadcast %31 : f32 to vector<2x256xf32>
    %85 = arith.mulf %84, %16 : vector<2x256xf32>
    %86 = arith.addf %83, %85 : vector<2x256xf32>
    %c1_i32_13 = arith.constant 1 : i32
    %87 = tpu.dynamic_rotate %86 by %c1_i32_13 dim 1 : vector<2x256xf32>, i32 -> vector<2x256xf32>
    %c1_i32_14 = arith.constant 1 : i32
    %88 = vector.broadcast %c1_i32_14 : i32 to vector<2x256xi32>
    %89 = arith.cmpi sge, %41, %88 : vector<2x256xi32>
    %cst_15 = arith.constant 0.000000e+00 : f32
    %90 = vector.broadcast %cst_15 : f32 to vector<2x256xf32>
    %91 = arith.select %89, %87, %90 : vector<2x256xi1>, vector<2x256xf32>
    %92 = arith.addf %81, %91 : vector<2x256xf32>
    %93 = vector.broadcast %23 : f32 to vector<2x256xf32>
    %94 = arith.mulf %93, %18 : vector<2x256xf32>
    %95 = vector.broadcast %32 : f32 to vector<2x256xf32>
    %96 = arith.mulf %95, %16 : vector<2x256xf32>
    %97 = arith.addf %94, %96 : vector<2x256xf32>
    %98 = arith.addf %92, %97 : vector<2x256xf32>
    %99 = vector.broadcast %24 : f32 to vector<2x256xf32>
    %100 = arith.mulf %99, %18 : vector<2x256xf32>
    %101 = vector.broadcast %33 : f32 to vector<2x256xf32>
    %102 = arith.mulf %101, %16 : vector<2x256xf32>
    %103 = arith.addf %100, %102 : vector<2x256xf32>
    %c255_i32 = arith.constant 255 : i32
    %104 = tpu.dynamic_rotate %103 by %c255_i32 dim 1 : vector<2x256xf32>, i32 -> vector<2x256xf32>
    %c15_i32_16 = arith.constant 15 : i32
    %105 = vector.broadcast %c15_i32_16 : i32 to vector<2x256xi32>
    %106 = arith.cmpi slt, %41, %105 : vector<2x256xi32>
    %cst_17 = arith.constant 0.000000e+00 : f32
    %107 = vector.broadcast %cst_17 : f32 to vector<2x256xf32>
    %108 = arith.select %106, %104, %107 : vector<2x256xi1>, vector<2x256xf32>
    %109 = arith.addf %98, %108 : vector<2x256xf32>
    %110 = vector.broadcast %25 : f32 to vector<2x256xf32>
    %111 = arith.mulf %110, %18 : vector<2x256xf32>
    %112 = vector.broadcast %34 : f32 to vector<2x256xf32>
    %113 = arith.mulf %112, %16 : vector<2x256xf32>
    %114 = arith.addf %111, %113 : vector<2x256xf32>
    %c241_i32 = arith.constant 241 : i32
    %115 = tpu.dynamic_rotate %114 by %c241_i32 dim 1 : vector<2x256xf32>, i32 -> vector<2x256xf32>
    %c15_i32_18 = arith.constant 15 : i32
    %116 = vector.broadcast %c15_i32_18 : i32 to vector<2x256xi32>
    %117 = arith.cmpi slt, %39, %116 : vector<2x256xi32>
    %c1_i32_19 = arith.constant 1 : i32
    %118 = vector.broadcast %c1_i32_19 : i32 to vector<2x256xi32>
    %119 = arith.cmpi sge, %41, %118 : vector<2x256xi32>
    %120 = arith.andi %117, %119 : vector<2x256xi1>
    %cst_20 = arith.constant 0.000000e+00 : f32
    %121 = vector.broadcast %cst_20 : f32 to vector<2x256xf32>
    %122 = arith.select %120, %115, %121 : vector<2x256xi1>, vector<2x256xf32>
    %123 = arith.addf %109, %122 : vector<2x256xf32>
    %124 = vector.broadcast %26 : f32 to vector<2x256xf32>
    %125 = arith.mulf %124, %18 : vector<2x256xf32>
    %126 = vector.broadcast %35 : f32 to vector<2x256xf32>
    %127 = arith.mulf %126, %16 : vector<2x256xf32>
    %128 = arith.addf %125, %127 : vector<2x256xf32>
    %c240_i32 = arith.constant 240 : i32
    %129 = tpu.dynamic_rotate %128 by %c240_i32 dim 1 : vector<2x256xf32>, i32 -> vector<2x256xf32>
    %c15_i32_21 = arith.constant 15 : i32
    %130 = vector.broadcast %c15_i32_21 : i32 to vector<2x256xi32>
    %131 = arith.cmpi slt, %39, %130 : vector<2x256xi32>
    %cst_22 = arith.constant 0.000000e+00 : f32
    %132 = vector.broadcast %cst_22 : f32 to vector<2x256xf32>
    %133 = arith.select %131, %129, %132 : vector<2x256xi1>, vector<2x256xf32>
    %134 = arith.addf %123, %133 : vector<2x256xf32>
    %135 = vector.broadcast %27 : f32 to vector<2x256xf32>
    %136 = arith.mulf %135, %18 : vector<2x256xf32>
    %137 = vector.broadcast %36 : f32 to vector<2x256xf32>
    %138 = arith.mulf %137, %16 : vector<2x256xf32>
    %139 = arith.addf %136, %138 : vector<2x256xf32>
    %c239_i32 = arith.constant 239 : i32
    %140 = tpu.dynamic_rotate %139 by %c239_i32 dim 1 : vector<2x256xf32>, i32 -> vector<2x256xf32>
    %c15_i32_23 = arith.constant 15 : i32
    %141 = vector.broadcast %c15_i32_23 : i32 to vector<2x256xi32>
    %142 = arith.cmpi slt, %39, %141 : vector<2x256xi32>
    %c15_i32_24 = arith.constant 15 : i32
    %143 = vector.broadcast %c15_i32_24 : i32 to vector<2x256xi32>
    %144 = arith.cmpi slt, %41, %143 : vector<2x256xi32>
    %145 = arith.andi %142, %144 : vector<2x256xi1>
    %cst_25 = arith.constant 0.000000e+00 : f32
    %146 = vector.broadcast %cst_25 : f32 to vector<2x256xf32>
    %147 = arith.select %145, %140, %146 : vector<2x256xi1>, vector<2x256xf32>
    %148 = arith.addf %134, %147 : vector<2x256xf32>
    %149 = arith.negf %148 : vector<2x256xf32>
    %150 = math.exp %149 : vector<2x256xf32>
    %cst_26 = arith.constant 1.000000e+00 : f32
    %151 = vector.broadcast %cst_26 : f32 to vector<2x256xf32>
    %152 = arith.addf %151, %150 : vector<2x256xf32>
    %153 = arith.divf %151, %152 : vector<2x256xf32>
    %c0_27 = arith.constant 0 : index
    %c0_28 = arith.constant 0 : index
    %154 = vector.load %arg2[%c0_27, %c0_28] : memref<2x256xf32, #tpu.memory_space<vmem>>, vector<2x256xf32>
    tpu.vector_store %arg2[%c0_27, %c0_28], %153 {strides = array<i32>} : memref<2x256xf32, #tpu.memory_space<vmem>>, vector<2x256xf32>,
    return
  }
}

</mosaic_0001>

<bundles_post_ra>
// kernel: tpu_custom_call.1
= control target key start
LH: loop header
LB: loop body
LE: loop exit
PB: predicated region body
PF: predicated region fallthrough
CT: control target
= control target key end

     0   :  { %7 = vsyncpa [#allocation5], 0  ;;  %s799_s0 = inlined_call_operand.hbm [shape: f32[18], index: 0, kind: input, shape index: {}]   ;;  %s800_s1 = inlined_call_operand.hbm [shape: f32[2,4,256], index: 1, kind: input, shape index: {}]   ;;  %s801_s2 = inlined_call_operand.hbm [shape: f32[2,256], index: 2, kind: output, shape index: {}]  }
   0x1   :  { %8 = vsyncpa [#allocation3], 0 }
   0x2   :  { %9 = vsyncpa [#allocation4], 0  ;;  %s15_s11 = sshll.u32 %s799_s0, 4  ;;  %s23_s14 = sshll.u32 %s800_s1, 4  ;;  %s16_s11 = int_to_ptr.hbm [resolvable:$true] %s15_s11  ;;  %s24_s14 = int_to_ptr.hbm [resolvable:$true] %s23_s14 }
   0x3   :  { %s564_s15 = smov [#allocation2]   ;;  %s565_s16 = smov [#allocation6]  }
   0x4   :  { %18 = dma.hbm_to_smem %s16_s11, 16, %s564_s15, [#allocation5]  }
   0x5   :  { %s25_s17 = sshll.u32 %s565_s16, 4  ;;  %s566_s18 = smov 128   ;;  %s26_s17 = int_to_ptr.vmem [resolvable:$true] %s25_s17 }
   0x6   :  { %s567_s19 = smov 8  }
   0x7   :  { %31 = dma.hbm_to_vmem [thread:$0]  %s24_s14, 256, %s26_s17, [#allocation3], %s566_s18, %s566_s18, %s567_s19  }
   0x8   :  { %558 = dma.done.wait [#allocation5], 16  }
   0x9   :  { %559 = vsyncadd [#allocation5], 4294967280 }
   0xa   :  { %560 = dma.done.wait [#allocation3], 256  }
   0xb   :  { %561 = vsyncadd [#allocation3], 4294967040 }
   0xc   :  { %40 = sfence }
   0xd   :  { %v41_v0 = vld [vmem:[#allocation6] sm:$0xff]  ;;  %v42_v1 = vld [vmem:[#allocation6 + $0x8] sm:$0xff]  ;;  %s598_s0 = sld [smem:[#allocation2 + $0x1]]  ;;  %vm140_vm0 = vcmask 1041409   ;;  %s568_s30 = smov 16  }
   0xe   :  { %v45_v2 = vrot.slane %v41_v0, 5  ;;  %v47_v3 = vrot.slane %v42_v1, 5  ;;  %v55_v4 = vrot.slane %v41_v0, 6  ;;  %v57_v5 = vrot.slane %v42_v1, 6  ;;  %s600_s1 = sld [smem:[#allocation2 + $0xa]]  ;;  %s569_s3 = smov 17  }
   0xf   :  { %v65_v6 = vrot.slane %v41_v0, 7  ;;  %v67_v7 = vrot.slane %v42_v1, 7  ;;  %s602_s20 = sld [smem:[#allocation2]]  ;;  %s570_s6 = smov 15  }
  0x10   :  { %v46_v8 = vrot.slane %v45_v2, 4  ;;  %v48_v9 = vrot.slane %v47_v3, 4  ;;  %v56_v10 = vrot.slane %v55_v4, 4  ;;  %v58_v11 = vrot.slane %v57_v5, 4  ;;  %s466_s21 = sld [smem:[#allocation2 + $0x9]]  ;;  %s571_s9 = smov 1  }
  0x11   :  { %v66_v12 = vrot.slane %v65_v6, 4  ;;  %v68_v13 = vrot.slane %v67_v7, 4  ;;  %s604_s22 = sld [smem:[#allocation2 + $0x3]]  ;;  %s572_s10 = smov 113  }
  0x12   :  { %v51_v14 = vadd.f32 %v46_v8, %v41_v0  ;;  %v52_v15 = vadd.f32 %v48_v9, %v42_v1  ;;  %v53_v16 = vmax.f32 %v41_v0, %v46_v8  ;;  %v54_v17 = vmax.f32 %v42_v1, %v48_v9  ;;  %s606_s23 = sld [smem:[#allocation2 + $0xc]]  ;;  %s573_s11 = smov 127  }
  0x13   :  { %s609_s24 = sld [smem:[#allocation2 + $0x2]]  ;;  %v162_v27 = vstv %s598_s0  ;;  %s574_s12 = smov 112  }
  0x14   :  { %v61_v18 = vadd.f32 %v56_v10, %v51_v14  ;;  %v62_v19 = vadd.f32 %v58_v11, %v52_v15  ;;  %v63_v20 = vmax.f32 %v53_v16, %v56_v10  ;;  %v64_v21 = vmax.f32 %v54_v17, %v58_v11  ;;  %s631_s25 = sld [smem:[#allocation2 + $0xb]]  ;;  %s575_s13 = smov 111  }
  0x15   :  { %v165_v22 = vstv %s600_s1  ;;  %v126_v28 = vstv %s602_s20  ;;  %s633_s26 = sld [smem:[#allocation2 + $0x6]]  ;;  %s576_s16 = smov [#allocation7]  }
  0x16   :  { %v71_v23 = vadd.f32 %v66_v12, %v61_v18  ;;  %v72_v24 = vadd.f32 %v68_v13, %v62_v19  ;;  %v611_v25 = vmax.f32 %v63_v20, %v66_v12  ;;  %v613_v26 = vmax.f32 %v64_v21, %v68_v13  ;;  %s638_s27 = sld [smem:[#allocation2 + $0xf]]  ;;  %s445_s17 = sshll.u32 %s576_s16, 4  ;;  %s446_s17 = int_to_ptr.vmem [resolvable:$true] %s445_s17 }
  0x17   :  { %v129_v29 = vstv %s466_s21  ;;  %v224_v36 = vstv %s604_s22  ;;  %s640_s28 = sld [smem:[#allocation2 + $0x5]]  ;;  %s447_s0 = sshll.u32 %s801_s2, 4  ;;  %s448_s0 = int_to_ptr.hbm [resolvable:$true] %s447_s0 }
  0x18   :  { %v617_v30 = vmul.f32 0.25, %v71_v23  ;;  %v619_v31 = vmul.f32 0.25, %v72_v24  ;;  %v166_v32 = vmul.f32 %v165_v22, %v611_v25  ;;  %v167_v33 = vmul.f32 %v165_v22, %v613_v26  ;;  %s642_s29 = sld [smem:[#allocation2 + $0xe]] }
  0x19   :  { %v130_v34 = vmul.f32 %v129_v29, %v611_v25  ;;  %v131_v35 = vmul.f32 %v129_v29, %v613_v26  ;;  %v227_v37 = vstv %s606_s23  ;;  %v191_v48 = vstv %s609_s24  ;;  %s659_s4 = sld [smem:[#allocation2 + $0x7]] }
  0x1a   :  { %v163_v38 = vmul.f32 %v162_v27, %v617_v30  ;;  %v164_v39 = vmul.f32 %v162_v27, %v619_v31  ;;  %v127_v40 = vmul.f32 %v126_v28, %v617_v30  ;;  %v128_v41 = vmul.f32 %v126_v28, %v619_v31  ;;  %s663_s5 = sld [smem:[#allocation2 + $0x10]] }
  0x1b   :  { %v225_v46 = vmul.f32 %v224_v36, %v617_v30  ;;  %v228_v47 = vmul.f32 %v227_v37, %v611_v25  ;;  %v226_v55 = vmul.f32 %v224_v36, %v619_v31  ;;  %v229_v56 = vmul.f32 %v227_v37, %v613_v26  ;;  %s677_s7 = sld [smem:[#allocation2 + $0x8]] }
  0x1c   :  { %v168_v42 = vadd.f32 %v166_v32, %v163_v38  ;;  %v169_v43 = vadd.f32 %v167_v33, %v164_v39  ;;  %v132_v44 = vadd.f32 %v130_v34, %v127_v40  ;;  %v133_v45 = vadd.f32 %v131_v35, %v128_v41  ;;  %s681_s8 = sld [smem:[#allocation2 + $0x11]] }
  0x1d   :  { %v230_v58 = vadd.f32 %v228_v47, %v225_v46  ;;  %v192_v59 = vmul.f32 %v191_v48, %v617_v30  ;;  %v193_v60 = vmul.f32 %v191_v48, %v619_v31  ;;  %v194_v0 = vstv %s631_s25  ;;  %s461_s14 = sld [smem:[#allocation2 + $0x4]] }
  0x1e   :  { %v172_v49 = vperm.slane %v168_v42, 0  ;;  %v174_v50 = vperm.slane %v169_v43, 0  ;;  %v136_v51 = vperm.slane %v132_v44, 0  ;;  %v138_v52 = vperm.slane %v133_v45, 0  ;;  %s470_s15 = sld [smem:[#allocation2 + $0xd]] }
  0x1f   :  { %v173_v57 = vperm.slane %v168_v42, 4  ;;  %v175_v61 = vperm.slane %v169_v43, 4  ;;  %v137_v62 = vperm.slane %v132_v44, 4  ;;  %v139_v63 = vperm.slane %v133_v45, 4 }
  0x20   :  { %v176_v53 = vsel %vm140_vm0, %v174_v50, %v172_v49  ;;  %v141_v54 = vsel %vm140_vm0, %v138_v52, %v136_v51  ;;  %v195_v1 = vmul.f32 %v194_v0, %v611_v25  ;;  %v196_v2 = vmul.f32 %v194_v0, %v613_v26 }
  0x21   :  { %180 = vrot.lane.b32.xlu1 %v176_v53, %s568_s30  ;;  %145 = vrot.lane.b32.xlu0 %v141_v54, %s569_s3  ;;  %v231_v3 = vadd.f32 %v229_v56, %v226_v55  ;;  %v302_v6 = vstv %s633_s26  ;;  %v177_v7 = vsel %vm140_vm0, %v175_v61, %v173_v57  ;;  %v142_v8 = vsel %vm140_vm0, %v139_v63, %v137_v62 }
  0x22   :  { %v197_v4 = vadd.f32 %v195_v1, %v192_v59  ;;  %v198_v5 = vadd.f32 %v196_v2, %v193_v60  ;;  %v235_v9 = vperm.slane %v230_v58, 4  ;;  %v305_v10 = vstv %s638_s27 }
  0x23   :  { %v273_v13 = vstv %s640_s28  ;;  %v276_v14 = vstv %s642_s29  ;;  %v237_v15 = vperm.slane %v231_v3, 4  ;;  %v234_v16 = vperm.slane %v230_v58, 0 }
  0x24   :  { %v201_v11 = vperm.slane %v197_v4, 0  ;;  %v203_v12 = vperm.slane %v198_v5, 0  ;;  %v303_v17 = vmul.f32 %v302_v6, %v617_v30  ;;  %v304_v18 = vmul.f32 %v302_v6, %v619_v31 }
  0x25   :  { %v236_v19 = vperm.slane %v231_v3, 0  ;;  %v306_v21 = vmul.f32 %v305_v10, %v611_v25  ;;  %v307_v22 = vmul.f32 %v305_v10, %v613_v26  ;;  %v274_v23 = vmul.f32 %v273_v13, %v617_v30 }
  0x26   :  { %v205_v20 = vsel %vm140_vm0, %v203_v12, %v201_v11  ;;  %v275_v24 = vmul.f32 %v273_v13, %v619_v31  ;;  %v277_v27 = vmul.f32 %v276_v14, %v611_v25  ;;  %v278_v28 = vmul.f32 %v276_v14, %v613_v26 }
  0x27   :  { %209 = vrot.lane.b32.xlu2 %v205_v20, %s570_s6  ;;  %v202_v29 = vperm.slane %v197_v4, 4  ;;  %v204_v32 = vperm.slane %v198_v5, 4  ;;  %v239_v33 = vsel %vm140_vm0, %v237_v15, %v235_v9  ;;  %v308_v34 = vadd.f32 %v306_v21, %v303_v17 }
  0x28   :  { %v309_v35 = vadd.f32 %v307_v22, %v304_v18  ;;  %v238_v36 = vsel %vm140_vm0, %v236_v19, %v234_v16  ;;  %v279_v37 = vadd.f32 %v277_v27, %v274_v23  ;;  %v280_v38 = vadd.f32 %v278_v28, %v275_v24 }
  0x29   :  { %182 = vrot.lane.b32.xlu1 %v177_v7, %s568_s30  ;;  %147 = vrot.lane.b32.xlu0 %v142_v8, %s569_s3  ;;  %v335_v39 = vstv %s659_s4  ;;  %v206_v40 = vsel %vm140_vm0, %v204_v32, %v202_v29  ;;  %v338_v41 = vstv %s663_s5  ;;  %v312_v42 = vperm.slane %v308_v34, 0 }
  0x2a   :  { %v314_v43 = vperm.slane %v309_v35, 0  ;;  %v336_v44 = vmul.f32 %v335_v39, %v617_v30  ;;  %v337_v45 = vmul.f32 %v335_v39, %v619_v31  ;;  %v284_v46 = vperm.slane %v279_v37, 4 }
  0x2b   :  { %v286_v47 = vperm.slane %v280_v38, 4  ;;  %v339_v48 = vmul.f32 %v338_v41, %v611_v25  ;;  %v340_v49 = vmul.f32 %v338_v41, %v613_v26  ;;  %v283_v50 = vperm.slane %v279_v37, 0 }
  0x2c   :  { %v285_v51 = vperm.slane %v280_v38, 0  ;;  %v316_v52 = vsel %vm140_vm0, %v314_v43, %v312_v42  ;;  %v364_v53 = vstv %s677_s7  ;;  %v367_v57 = vstv %s681_s8 }
  0x2d   :  { %v288_v54 = vsel %vm140_vm0, %v286_v47, %v284_v46  ;;  %v341_v55 = vadd.f32 %v339_v48, %v336_v44  ;;  %v342_v56 = vadd.f32 %v340_v49, %v337_v45  ;;  %v365_v59 = vmul.f32 %v364_v53, %v617_v30 }
  0x2e   :  { %v287_v58 = vsel %vm140_vm0, %v285_v51, %v283_v50  ;;  %v366_v60 = vmul.f32 %v364_v53, %v619_v31  ;;  %v368_v61 = vmul.f32 %v367_v57, %v611_v25  ;;  %v369_v62 = vmul.f32 %v367_v57, %v613_v26 }
  0x2f   :  { %211 = vrot.lane.b32.xlu2 %v206_v40, %s570_s6  ;;  %v346_v63 = vperm.slane %v341_v55, 4  ;;  %v348_v0 = vperm.slane %v342_v56, 4  ;;  %v345_v1 = vperm.slane %v341_v55, 0  ;;  %v347_v2 = vperm.slane %v342_v56, 0 }
  0x30   :  { %v313_v3 = vperm.slane %v308_v34, 4  ;;  %v315_v4 = vperm.slane %v309_v35, 4  ;;  %v370_v7 = vadd.f32 %v368_v61, %v365_v59  ;;  %v371_v8 = vadd.f32 %v369_v62, %v366_v60 }
  0x31   :  { %244 = vrot.lane.b32.xlu1 %v239_v33, %s571_s9  ;;  %242 = vrot.lane.b32.xlu0 %v238_v36, %s571_s9  ;;  %v350_v5 = vsel %vm140_vm0, %v348_v0, %v346_v63  ;;  %v349_v6 = vsel %vm140_vm0, %v347_v2, %v345_v1  ;;  %v95_v18 = vlaneseq  ;;  %v253_v32 = vstv %s461_s14 }
  0x32   :  { %v317_v9 = vsel %vm140_vm0, %v315_v4, %v313_v3  ;;  %v375_v10 = vperm.slane %v370_v7, 4  ;;  %v377_v11 = vperm.slane %v371_v8, 4  ;;  %v374_v12 = vperm.slane %v370_v7, 0 }
  0x33   :  { %v376_v13 = vperm.slane %v371_v8, 0  ;;  %v703_v20 = vand.u32 127, %v95_v18  ;;  %v256_v33 = vstv %s470_s15  ;;  %v254_v36 = vmul.f32 %v253_v32, %v617_v30 }
  0x34   :  { %v379_v14 = vsel %vm140_vm0, %v377_v11, %v375_v10  ;;  %v257_v37 = vmul.f32 %v256_v33, %v611_v25  ;;  %v255_v41 = vmul.f32 %v253_v32, %v619_v31  ;;  %v258_v25 = vmul.f32 %v256_v33, %v613_v26 }
  0x35   :  { %v378_v15 = vsel %vm140_vm0, %v376_v13, %v374_v12  ;;  %v706_v21 = vadd.s32 128, %v703_v20  ;;  %v101_v24 = vshrl.u32 %v703_v20, 4  ;;  %v116_v27 = vand.u32 15, %v703_v20 }
  0x36   :  { %vm184_vm2 = vcmp.lt.s32.totalorder %v703_v20, 16  ;;  %vm149_vm3 = vcmp.lt.s32.totalorder %v703_v20, 17  ;;  %vm213_vm7 = vcmp.lt.s32.totalorder %v703_v20, 15  ;;  %vm246_vm9 = vcmp.lt.s32.totalorder %v703_v20, 1 }
  0x37   :  { %291 = vrot.lane.b32.xlu2 %v287_v58, %s573_s11  ;;  %v123_v28 = vand.u32 15, %v706_v21  ;;  %vm711_vm1 = vcmp.ge.s32.totalorder %v101_v24, 1  ;;  %vm717_vm4 = vcmp.ge.s32.totalorder %v116_v27, 1  ;;  %vm736_vm8 = vcmp.lt.s32.totalorder %v116_v27, 15 }
  0x38   :  { %vm156_vm6 = vmand %vm711_vm1, %vm717_vm4  ;;  %v259_v31 = vadd.f32 %v257_v37, %v254_v36  ;;  %v260_v49 = vadd.f32 %v258_v25, %v255_v41  ;;  %vm295_vm12 = vcmp.lt.s32.totalorder %v703_v20, 127  ;;  %v108_v63 = vshrl.u32 %v706_v21, 4 }
  0x39   :  { %320 = vrot.lane.b32.xlu1 %v316_v52, %s572_s10  ;;  %293 = vrot.lane.b32.xlu0 %v288_v54, %s573_s11  ;;  %vm723_vm5 = vcmp.ge.s32.totalorder %v123_v28, 1  ;;  %vm747_vm10 = vcmp.lt.s32.totalorder %v123_v28, 15  ;;  %vm218_vm11 = vmand %vm711_vm1, %vm736_vm8  ;;  %vm324_vm13 = vcmp.lt.s32.totalorder %v703_v20, 113  ;;  %vm357_vm15 = vcmp.lt.s32.totalorder %v703_v20, 112 }
  0x3a   :  { %v263_v58 = vperm.slane %v259_v31, 0  ;;  %v264_v59 = vperm.slane %v259_v31, 4  ;;  %v265_v61 = vperm.slane %v260_v49, 0  ;;  %v266_v62 = vperm.slane %v260_v49, 4 }
  0x3b   :  { %vm766_vm14 = vcmp.lt.s32.totalorder %v108_v63, 15 }
  0x3c   :  { %v267_v10 = vsel %vm140_vm0, %v265_v61, %v263_v58  ;;  %v268_v11 = vsel %vm140_vm0, %v266_v62, %v264_v59  ;;  %vm330_vm0 = vmand %vm766_vm14, %vm723_vm5 }
  0x3f   :  { %322 = vrot.lane.b32.xlu2 %v317_v9, %s572_s10 }
  0x41   :  { %355 = vrot.lane.b32.xlu1 %v350_v5, %s574_s12  ;;  %353 = vrot.lane.b32.xlu0 %v349_v6, %s574_s12 }
  0x47   :  { %382 = vrot.lane.b32.xlu2 %v378_v15, %s575_s13 }
  0x49   :  { %384 = vrot.lane.b32.xlu0 %v379_v14, %s575_s13 }
  0x81   :  { %v210_v19 = vpop.permute.xlu2 %209 }
  0x89   :  { %v212_v29 = vpop.permute.xlu2 %211 }
  0x8a   :  { %v214_v51 = vsel %vm213_vm7, %v210_v19, %v212_v29  ;;  %v215_v52 = vsel %vm213_vm7, %v212_v29, %v210_v19 }
  0x8b   :  { %v220_v0 = vsel %vm218_vm11, %v215_v52, 0.0  ;;  %v221_v1 = vsel %vm747_vm10, %v214_v51, 0.0 }
  0x91   :  { %v292_v26 = vpop.permute.xlu2 %291 }
  0x93   :  { %v181_v16 = vpop.permute.xlu1 %180  ;;  %v146_v17 = vpop.permute.xlu0 %145 }
  0x99   :  { %v323_v13 = vpop.permute.xlu2 %322 }
  0x9b   :  { %v183_v22 = vpop.permute.xlu1 %182  ;;  %v148_v23 = vpop.permute.xlu0 %147 }
  0x9c   :  { %v186_v42 = vsel %vm184_vm2, %v183_v22, %v181_v16  ;;  %v150_v43 = vsel %vm149_vm3, %v146_v17, %v148_v23  ;;  %v151_v30 = vsel %vm149_vm3, %v148_v23, %v146_v17  ;;  %v185_v45 = vsel %vm184_vm2, %v181_v16, %v183_v22  ;;  %vm390_vm2 = vmand %vm766_vm14, %vm747_vm10 }
  0x9d   :  { %v187_v46 = vsel %vm711_vm1, %v186_v42, 0.0  ;;  %v158_v47 = vsel %vm156_vm6, %v151_v30, 0.0  ;;  %v159_v48 = vsel %vm723_vm5, %v150_v43, 0.0  ;;  %vm386_vm1 = vcmp.lt.s32.totalorder %v703_v20, 111 }
  0x9e   :  { %v189_v53 = vadd.f32 %v187_v46, %v158_v47  ;;  %v190_v54 = vadd.f32 %v185_v45, %v159_v48 }
  0xa0   :  { %v222_v4 = vadd.f32 %v220_v0, %v189_v53  ;;  %v223_v5 = vadd.f32 %v221_v1, %v190_v54 }
  0xa1   :  { %v383_v34 = vpop.permute.xlu2 %382 }
  0xa3   :  { %v245_v39 = vpop.permute.xlu1 %244  ;;  %v243_v40 = vpop.permute.xlu0 %242 }
  0xa4   :  { %v247_v55 = vsel %vm246_vm9, %v243_v40, %v245_v39  ;;  %v248_v56 = vsel %vm246_vm9, %v245_v39, %v243_v40 }
  0xa5   :  { %v249_v2 = vsel %vm717_vm4, %v248_v56, 0.0  ;;  %v250_v3 = vsel %vm723_vm5, %v247_v55, 0.0 }
  0xa6   :  { %v251_v6 = vadd.f32 %v249_v2, %v222_v4  ;;  %v252_v7 = vadd.f32 %v250_v3, %v223_v5 }
  0xa8   :  { %v271_v18 = vadd.f32 %v267_v10, %v251_v6  ;;  %v272_v19 = vadd.f32 %v268_v11, %v252_v7 }
  0xab   :  { %v321_v57 = vpop.permute.xlu1 %320  ;;  %v294_v60 = vpop.permute.xlu0 %293 }
  0xac   :  { %v296_v8 = vsel %vm295_vm12, %v292_v26, %v294_v60  ;;  %v297_v9 = vsel %vm295_vm12, %v294_v60, %v292_v26  ;;  %v325_v21 = vsel %vm324_vm13, %v321_v57, %v323_v13  ;;  %v326_v22 = vsel %vm324_vm13, %v323_v13, %v321_v57 }
  0xad   :  { %v298_v14 = vsel %vm736_vm8, %v296_v8, 0.0  ;;  %v299_v15 = vsel %vm747_vm10, %v297_v9, 0.0  ;;  %v331_v28 = vsel %vm717_vm4, %v325_v21, 0.0  ;;  %v332_v29 = vsel %vm330_vm0, %v326_v22, 0.0 }
  0xae   :  { %v300_v23 = vadd.f32 %v298_v14, %v271_v18  ;;  %v301_v24 = vadd.f32 %v299_v15, %v272_v19  ;;  %vm436_vm10 = vcmask 1041408  }
  0xb0   :  { %v333_v36 = vadd.f32 %v331_v28, %v300_v23  ;;  %v334_v37 = vadd.f32 %v332_v29, %v301_v24 }
  0xb3   :  { %v356_v16 = vpop.permute.xlu1 %355  ;;  %v354_v17 = vpop.permute.xlu0 %353 }
  0xb4   :  { %v359_v27 = vsel %vm357_vm15, %v356_v16, %v354_v17  ;;  %v358_v32 = vsel %vm357_vm15, %v354_v17, %v356_v16 }
  0xb5   :  { %v361_v33 = vsel %vm766_vm14, %v359_v27, 0.0  ;;  %v362_v39 = vadd.f32 %v358_v32, %v333_v36 }
  0xb6   :  { %v363_v40 = vadd.f32 %v361_v33, %v334_v37 }
  0xbb   :  { %v385_v38 = vpop.permute.xlu0 %384 }
  0xbc   :  { %v387_v35 = vsel %vm386_vm1, %v383_v34, %v385_v38  ;;  %v388_v41 = vsel %vm386_vm1, %v385_v38, %v383_v34 }
  0xbd   :  { %v391_v42 = vsel %vm736_vm8, %v387_v35, 0.0  ;;  %v392_v43 = vsel %vm390_vm2, %v388_v41, 0.0 }
  0xbe   :  { %v393_v30 = vadd.f32 %v391_v42, %v362_v39  ;;  %v394_v25 = vadd.f32 %v392_v43, %v363_v40 }
  0xc0   :  { %v475_v31 = vmul.f32 -1.442695, %v393_v30  ;;  %v476_v20 = vmul.f32 -1.442695, %v394_v25 }
  0xc2   :  { %490 = vpow2.f32 %v475_v31 }
  0xc3   :  { %492 = vpow2.f32 %v476_v20 }
  0xc8   :  { %v491_v45 = vpop.eup %490 }
  0xc9   :  { %v493_v46 = vpop.eup %492  ;;  %v401_v47 = vadd.f32 1.0, %v491_v45 }
  0xca   :  { %v402_v48 = vadd.f32 1.0, %v493_v46 }
  0xcb   :  { %494 = vrcp.f32 %v401_v47  ;;  %vm408_vm5 = vweird.f32 %v401_v47  ;;  %v414_v58 = vand.u32 2147483648, %v401_v47  ;;  %v412_v60 = vand.u32 2147483647, %v401_v47 }
  0xcc   :  { %496 = vrcp.f32 %v402_v48  ;;  %v429_v54 = vand.u32 2147483648, %v402_v48  ;;  %v427_v56 = vand.u32 2147483647, %v402_v48  ;;  %vm423_vm7 = vweird.f32 %v402_v48 }
  0xcd   :  { %v415_v1 = vor.u32 1.1754944e-38, %v414_v58  ;;  %vm413_vm11 = vcmp.eq.f32.partialorder %v412_v60, 8.507059e+37 }
  0xce   :  { %v430_v62 = vor.u32 1.1754944e-38, %v429_v54  ;;  %vm428_vm9 = vcmp.eq.f32.partialorder %v427_v56, 8.507059e+37 }
  0xd1   :  { %v495_v26 = vpop.eup %494 }
  0xd2   :  { %v497_v49 = vpop.eup %496  ;;  %v404_v50 = vmul.f32 %v495_v26, %v401_v47  ;;  %vm409_vm3 = vweird.f32 %v495_v26 }
  0xd3   :  { %v419_v51 = vmul.f32 %v497_v49, %v402_v48  ;;  %vm424_vm4 = vweird.f32 %v497_v49  ;;  %vm790_vm6 = vmor %vm408_vm5, %vm409_vm3 }
  0xd4   :  { %v405_v52 = vsub.f32 1.0, %v404_v50  ;;  %vm425_vm8 = vmor %vm423_vm7, %vm424_vm4 }
  0xd5   :  { %v420_v44 = vsub.f32 1.0, %v419_v51 }
  0xd6   :  { %v406_v53 = vmul.f32 %v495_v26, %v405_v52 }
  0xd7   :  { %v421_v55 = vmul.f32 %v497_v49, %v420_v44 }
  0xd8   :  { %v407_v57 = vadd.f32 %v495_v26, %v406_v53 }
  0xd9   :  { %v422_v61 = vadd.f32 %v497_v49, %v421_v55 }
  0xda   :  { %v411_v63 = vsel %vm790_vm6, %v495_v26, %v407_v57 }
  0xdb   :  { %v426_v0 = vsel %vm425_vm8, %v497_v49, %v422_v61  ;;  %v416_v4 = vsel %vm413_vm11, %v415_v1, %v411_v63 }
  0xdc   :  { %v431_v2 = vsel %vm428_vm9, %v430_v62, %v426_v0 }
  0xdd   :  { %v435_v3 = vrot.slane %v431_v2, 6 }
  0xdf   :  { %v437_v5 = vsel %vm436_vm10, %v416_v4, %v435_v3 }
  0xe0   :  { %439 = vst [vmem:[#allocation7] sm:$0xf] %v437_v5 }
  0xe1   :  { %450 = dma.vmem_to_hbm [thread:$0]  %s446_s17, 64, %s448_s0, [#allocation4]  }
  0xe2   :  { %562 = dma.done.wait [#allocation4], 64  }
  0xe3   :  { %563 = vsyncadd [#allocation4], 4294967232 }
  0xe4   :  { %455 = vsyncpa [#allocation3], 1 }
  0xe5   :  { %456 = vsyncpa [#allocation4], 1 }
  0xe6   :  { %457 = vsyncpa [#allocation5], 1 }

</bundles_post_ra>
